<compile_context>
chip_gen: v7x
topology: tpu7x:2x2x1
jax: 0.10.0
libtpu: 0.0.40
codegen_flags: <defaults>
</compile_context>

<pallas_src>
import jax
import jax.numpy as jnp
from jax.experimental import pallas as pl
from jax.experimental.pallas import tpu as pltpu


# ----------------------------- kernel bodies --------------------------------

def weight_norm_kernel(scale_ref, x_ref, o_ref):
    """Single-pass: block covers the FULL reduction axis N for a column tile."""
    x32 = x_ref[...].astype(jnp.float32)
    sumsq = jnp.sum(x32 * x32, axis=0, keepdims=True)          # (1, TD) f32, XLU
    col_scale = scale_ref[0] * jax.lax.rsqrt(sumsq)            # EUP, f32
    # Product in f32 (single rounding on the store; also the right choice on
    # v5e which has no bf16 VALU).  Re-index x_ref rather than keep x32 live.
    o_ref[...] = (x_ref[...].astype(jnp.float32) * col_scale).astype(o_ref.dtype)


def _make_colscale_kernel(n_total: int, tile_n: int):
    """Two-pass pass 1: accumulate sum(x^2) per column, finalize scale*rsqrt."""

    def kernel(scale_ref, x_ref, s_ref):
        n = pl.program_id(1)                                   # reduction axis (last)

        @pl.when(n == 0)
        def _init():
            s_ref[...] = jnp.zeros_like(s_ref)

        x32 = x_ref[...].astype(jnp.float32)
        if n_total % tile_n != 0:
            # Boundary block along N is padded with unspecified data: mask it
            # out of the reduction (column padding needs no mask — those
            # output columns' stores are dropped).
            rows_left = n_total - n * tile_n
            row = jax.lax.broadcasted_iota(jnp.int32, x32.shape, 0)
            x32 = jnp.where(row < rows_left, x32, 0.0)
        s_ref[...] += jnp.sum(x32 * x32, axis=0, keepdims=True)

        @pl.when(n == pl.num_programs(1) - 1)
        def _finalize():
            s_ref[...] = scale_ref[0] * jax.lax.rsqrt(s_ref[...])

    return kernel


def _apply_colscale_kernel(cs_ref, x_ref, o_ref):
    """Two-pass pass 2: broadcast-multiply by the per-column scale."""
    o_ref[...] = (x_ref[...].astype(jnp.float32) * cs_ref[...]).astype(o_ref.dtype)


# --------------------------- tiling heuristics -------------------------------

def _vmem_physical_bytes() -> int:
    """Per-TensorCore VMEM capacity (128 MiB v5e/v6e, 64 MiB v7x)."""
    try:
        return int(pltpu.get_tpu_info().vmem_capacity_bytes)
    except Exception:
        return 64 * 1024 * 1024  # conservative fallback (v7x)


def _choose_tile_d(N: int, D: int, itemsize: int,
                   budget_bytes: int, target_block_bytes: int):
    """Column tile for the single-pass kernel (full N resident per block).

    Returns None if even the narrowest legal tile exceeds the VMEM budget;
    the caller then switches to the two-pass scheme.

    Per-column VMEM cost of one grid step:
      2x double-buffered input + 2x double-buffered output  (N*itemsize each)
      + f32 working copy of the tile (upcast / product)      (N*4)
    """
    per_col = N * (4 * itemsize + 4)

    if min(D, 128) * per_col > budget_bytes:
        return None                                   # too tall -> two-pass

    if D <= 256 and D * per_col <= budget_bytes:
        return D                                      # single full-width block

    # >= ~1 KiB contiguous per DMA row of the strided column-tile copy.
    lane_floor = max(256, 1024 // itemsize)           # f32: 256, bf16: 512

    # Byte-budgeted width: one input block around target_block_bytes.
    tile_d = target_block_bytes // max(N * itemsize, 1)
    tile_d = (tile_d // 128) * 128

    # Aim for >= 8 grid steps over D (>= 4 per TensorCore on v7x) so the DMA
    # pipeline has a steady state and both cores get comparable work.
    steps_cap = (D // 8 // 128) * 128
    if steps_cap >= lane_floor:
        tile_d = min(tile_d, steps_cap)

    tile_d = max(lane_floor, tile_d)

    # The VMEM budget always wins over the DMA-chunk / step-count heuristics.
    max_fit = (budget_bytes // per_col // 128) * 128
    tile_d = max(128, min(tile_d, max_fit))

    if tile_d >= D:
        return D
    return int(tile_d)


# ------------------------------- wrappers ------------------------------------

def _two_pass_weight_norm(x2: jax.Array, scale, vmem_limit: int, budget: int):
    """Tall-N fallback: (1) per-column scale/||x||, (2) broadcast multiply."""
    N, D = x2.shape
    itemsize = x2.dtype.itemsize
    scale1 = jnp.asarray(scale, dtype=jnp.float32).reshape((1,))

    td = D if D <= 512 else 512                       # lane tile (>=128-aligned or ==D)

    # Pass 1 rows/block: double-buffered input + f32 square temp.
    tn1 = budget // max(td * (2 * itemsize + 4), 1)
    tn1 = max(8, min((tn1 // 8) * 8, 4096))
    tn1 = N if tn1 >= N else tn1

    col_scale = pl.pallas_call(
        _make_colscale_kernel(N, tn1),
        out_shape=jax.ShapeDtypeStruct((1, D), jnp.float32),
        grid=(pl.cdiv(D, td), pl.cdiv(N, tn1)),       # reduction axis last
        in_specs=[
            pl.BlockSpec(memory_space=pltpu.SMEM),                     # scale
            pl.BlockSpec((tn1, td), lambda j, i: (i, j)),              # x tile
        ],
        out_specs=pl.BlockSpec((1, td), lambda j, i: (0, j)),          # resident acc
        compiler_params=pltpu.CompilerParams(
            dimension_semantics=("parallel", "arbitrary"),
            vmem_limit_bytes=vmem_limit),
        cost_estimate=pl.CostEstimate(flops=2 * N * D, transcendentals=D,
                                      bytes_accessed=N * D * itemsize + 4 * D),
    )(scale1, x2)

    # Pass 2 rows/block: double-buffered input + output + f32 product temp.
    tn2 = budget // max(td * (4 * itemsize + 4), 1)
    tn2 = max(8, min((tn2 // 8) * 8, 4096))
    tn2 = N if tn2 >= N else tn2

    out = pl.pallas_call(
        _apply_colscale_kernel,
        out_shape=jax.ShapeDtypeStruct((N, D), x2.dtype),
        grid=(pl.cdiv(N, tn2), pl.cdiv(D, td)),
        in_specs=[
            pl.BlockSpec((1, td), lambda i, j: (0, j)),                # col_scale
            pl.BlockSpec((tn2, td), lambda i, j: (i, j)),              # x tile
        ],
        out_specs=pl.BlockSpec((tn2, td), lambda i, j: (i, j)),
        compiler_params=pltpu.CompilerParams(
            dimension_semantics=("parallel", "parallel"),
            vmem_limit_bytes=vmem_limit),
        cost_estimate=pl.CostEstimate(flops=N * D, transcendentals=0,
                                      bytes_accessed=2 * N * D * itemsize + 4 * D),
    )(col_scale, x2)
    return out


def weight_norm(x: jax.Array, scale: jax.Array, *, tile_d: int | None = None) -> jax.Array:
    """x * scale / ||x||_2 over dim 0 (keepdim) — matches the PyTorch module."""
    orig_shape = x.shape
    x2 = x if x.ndim == 2 else x.reshape(x.shape[0], -1)
    N, D = x2.shape
    itemsize = x2.dtype.itemsize
    scale1 = jnp.asarray(scale, dtype=jnp.float32).reshape((1,))

    # Tiny-input fast path: kernel launch + grid-step overhead dominates.
    if N * D <= 4096:
        sumsq = jnp.sum(jnp.square(x2.astype(jnp.float32)), axis=0, keepdims=True)
        out = (x2.astype(jnp.float32) * (scale1[0] * jax.lax.rsqrt(sumsq))).astype(x2.dtype)
        return out.reshape(orig_shape)

    vmem_phys = _vmem_physical_bytes()
    vmem_limit = min(int(vmem_phys * 0.75), 96 * 1024 * 1024)   # headroom for Mosaic scratch
    budget = int(vmem_limit * 0.8)                              # tiling budget < limit
    target_block = (4 << 20) if vmem_phys >= (96 << 20) else (2 << 20)

    if tile_d is None:
        tile_d = _choose_tile_d(N, D, itemsize, budget, target_block)

    if tile_d is None:
        # Tall N: full-N-resident blocks would exceed VMEM (v7x 64 MiB cliff).
        out = _two_pass_weight_norm(x2, scale1, vmem_limit, budget)
        return out.reshape(orig_shape)

    out = pl.pallas_call(
        weight_norm_kernel,
        out_shape=jax.ShapeDtypeStruct((N, D), x2.dtype),
        grid=(pl.cdiv(D, tile_d),),
        in_specs=[
            pl.BlockSpec(memory_space=pltpu.SMEM),                     # scale (1,) scalar
            pl.BlockSpec((N, tile_d), lambda j: (0, j)),               # full rows, col tile j
        ],
        out_specs=pl.BlockSpec((N, tile_d), lambda j: (0, j)),
        compiler_params=pltpu.CompilerParams(
            dimension_semantics=("parallel",),
            vmem_limit_bytes=vmem_limit),
        cost_estimate=pl.CostEstimate(flops=3 * N * D, transcendentals=D,
                                      bytes_accessed=2 * N * D * itemsize),
    )(scale1, x2)
    return out.reshape(orig_shape)


# -------------------------------- test ---------------------------------------

def _reference(x, scale):
    x2 = x.reshape(x.shape[0], -1)
    norm = jnp.sqrt(jnp.sum(jnp.square(x2.astype(jnp.float32)), axis=0, keepdims=True))
    ref = x2.astype(jnp.float32) * (jnp.asarray(scale, jnp.float32).reshape(()) / norm)
    return ref.reshape(x.shape)


if __name__ == "__main__":
    key = jax.random.PRNGKey(0)
    k1, k2, k3, k4 = jax.random.split(key, 4)

    # Module __init__ with affine=True: scale = nn.Parameter(torch.ones(1))
    scale = jnp.ones((1,), dtype=jnp.float32)

    # --- 1: 4-D module-like input, f32, single-pass kernel (auto tile) ------
    x1 = jax.random.normal(k1, (8, 4, 16, 16), dtype=jnp.float32)
    out1 = weight_norm(x1, scale)
    jax.block_until_ready(out1)
    ref1 = _reference(x1, scale)
    assert out1.shape == x1.shape and out1.dtype == x1.dtype
    assert jnp.allclose(out1, ref1, atol=1e-5, rtol=1e-5)

    # --- 2: bf16, multi-step grid with padded boundary tile (tile override) -
    x2 = jax.random.normal(k2, (16, 640), dtype=jnp.float32).astype(jnp.bfloat16)
    out2 = weight_norm(x2, scale, tile_d=256)
    jax.block_until_ready(out2)
    ref2 = _reference(x2, scale)
    assert out2.shape == x2.shape and out2.dtype == x2.dtype
    assert jnp.allclose(out2.astype(jnp.float32), ref2, atol=2e-2, rtol=2e-2)

    # --- 3: two-pass tall-N fallback, exercised with a tiny artificial budget
    x3 = jax.random.normal(k3, (300, 384), dtype=jnp.float32)
    out3 = _two_pass_weight_norm(x3, scale, vmem_limit=32 * 1024 * 1024,
                                 budget=64 * 1024)
    jax.block_until_ready(out3)
    ref3 = _reference(x3, scale)
    assert out3.shape == x3.shape and out3.dtype == x3.dtype
    assert jnp.allclose(out3, ref3, atol=1e-4, rtol=1e-4)

    # --- 4: tiny input, hits the jnp bypass path -----------------------------
    x4 = jax.random.normal(k4, (4, 32), dtype=jnp.float32)
    out4 = weight_norm(x4, scale)
    jax.block_until_ready(out4)
    ref4 = _reference(x4, scale)
    assert jnp.allclose(out4, ref4, atol=1e-5, rtol=1e-5)

    print("KERNEL_OK")
</pallas_src>

<mosaic_0001>
module attributes {stable_mosaic.version = 11 : i64} {
  func.func @weight_norm_kernel(%arg0: i32, %arg1: memref<1xf32, #tpu.memory_space<smem>>, %arg2: memref<8x1024xf32, #tpu.memory_space<vmem>>, %arg3: memref<8x1024xf32, #tpu.memory_space<vmem>>) attributes {dimension_semantics = [#tpu.dimension_semantics<parallel>], iteration_bounds = array<i64: 1>, scalar_prefetch = 0 : i64, scratch_operands = 0 : i64, tpu.core_type = #tpu.core_type<tc>, window_params = [{transform_indices = @transform_0, window_bounds = array<i64: 1>}, {transform_indices = @transform_1, window_bounds = array<i64: 8, 1024>}, {transform_indices = @transform_2, window_bounds = array<i64: 8, 1024>}]} {
    %c0 = arith.constant 0 : index
    %c0_0 = arith.constant 0 : index
    %0 = vector.load %arg2[%c0, %c0_0] : memref<8x1024xf32, #tpu.memory_space<vmem>>, vector<8x1024xf32>
    %1 = arith.mulf %0, %0 : vector<8x1024xf32>
    %cst = arith.constant dense<0.000000e+00> : vector<1024xf32>
    %2 = vector.multi_reduction <add>, %1, %cst [0] : vector<8x1024xf32> to vector<1024xf32>
    %3 = vector.shape_cast %2 : vector<1024xf32> to vector<1x1024xf32>
    %c0_1 = arith.constant 0 : index
    %4 = memref.load %arg1[%c0_1] : memref<1xf32, #tpu.memory_space<smem>>
    %5 = math.rsqrt %3 : vector<1x1024xf32>
    %6 = vector.broadcast %4 : f32 to vector<1x1024xf32>
    %7 = arith.mulf %6, %5 : vector<1x1024xf32>
    %c0_2 = arith.constant 0 : index
    %c0_3 = arith.constant 0 : index
    %8 = vector.load %arg2[%c0_2, %c0_3] : memref<8x1024xf32, #tpu.memory_space<vmem>>, vector<8x1024xf32>
    %9 = vector.broadcast %7 : vector<1x1024xf32> to vector<8x1024xf32>
    %10 = arith.mulf %8, %9 : vector<8x1024xf32>
    %c0_4 = arith.constant 0 : index
    %c0_5 = arith.constant 0 : index
    %11 = vector.load %arg3[%c0_4, %c0_5] : memref<8x1024xf32, #tpu.memory_space<vmem>>, vector<8x1024xf32>
    tpu.vector_store %arg3[%c0_4, %c0_5], %10 {strides = array<i32>} : memref<8x1024xf32, #tpu.memory_space<vmem>>, vector<8x1024xf32>,
    return
  }
  func.func @transform_0(%arg0: i32) -> i32 {
    %c0_i32 = arith.constant 0 : i32
    %c0_i32_0 = arith.constant 0 : i32
    return %c0_i32 : i32
  }
  func.func @transform_1(%arg0: i32) -> (i32, i32) {
    %c0_i32 = arith.constant 0 : i32
    %c0_i32_0 = arith.constant 0 : i32
    return %c0_i32, %arg0 : i32, i32
  }
  func.func @transform_2(%arg0: i32) -> (i32, i32) {
    %c0_i32 = arith.constant 0 : i32
    %c0_i32_0 = arith.constant 0 : i32
    return %c0_i32, %arg0 : i32, i32
  }
}

</mosaic_0001>

<bundles_post_ra>
// kernel: tpu_custom_call.1
= control target key start
LH: loop header
LB: loop body
LE: loop exit
PB: predicated region body
PF: predicated region fallthrough
CT: control target
= control target key end

     0   :  { %8 = vsyncpa [#allocation4], 0  ;;  %s288_s0 = inlined_call_operand.<no memory space> [shape: f32[1], index: 0, kind: input, shape index: {}]   ;;  %s289_s1 = inlined_call_operand.hbm [shape: f32[8,1024], index: 1, kind: input, shape index: {}]   ;;  %s290_s2 = inlined_call_operand.hbm [shape: f32[8,1024], index: 2, kind: output, shape index: {}]  }
   0x1   :  { %9 = vsyncpa [#allocation5], 0  ;;  %s204_s9 = smov [#allocation3]   ;;  %s156_s13 = scalar_lea.hbm %s289_s1, 1024 }
   0x2   :  { %s18_s10 = sshll.u32 %s204_s9, 4  ;;  %p157_p0 = scmp.ne.s32.totalorder %s289_s1, %s156_s13  ;;  %s19_s10 = int_to_ptr.vmem [resolvable:$true] %s18_s10 }
   0x3   :  { %p160_p1 = scmp.lt.u32.totalorder %s156_s13, %s289_s1 }
   0x5   :  { %p162_p2 = pnand %p160_p1, %p157_p0 }
   0x7   :  { %165 = shalt.err (!%p162_p2)
}
   0x8   :  { %s166_s18 = scalar_lea.vmem %s19_s10, 1024  ;;  %p171_p4 = scmp.lt.s32.totalorder %s19_s10, %s19_s10 }
   0x9   :  { %p167_p3 = scmp.ne.s32.totalorder %s19_s10, %s166_s18  ;;  %p172_p5 = scmp.lt.s32.totalorder %s166_s18, %s166_s18 }
   0xb   :  { %p173_p6 = por %p172_p5, %p171_p4 }
   0xd   :  { %p174_p7 = pnand %p173_p6, %p167_p3 }
   0xf   :  { %177 = shalt.err (!%p174_p7)
}
  0x10   :  { %21 = dma.hbm_to_vmem [thread:$0]  %s289_s1, 1024, %s19_s10, [#allocation4]  }
  0x11   :  { %200 = dma.done.wait [#allocation4], 1024  }
  0x12   :  { %201 = vsyncadd [#allocation4], 4294966272  ;;  %v233_v0 = vld [vmem:[#allocation3] sm:$0xff]  ;;  %v235_v1 = vld [vmem:[#allocation3 + $0x8] sm:$0xff] }
  0x13   :  { %v237_v2 = vld [vmem:[#allocation3 + $0x10] sm:$0xff]  ;;  %v33_v3 = vmul.f32 %v233_v0, %v233_v0  ;;  %v34_v4 = vmul.f32 %v235_v1, %v235_v1  ;;  %v245_v6 = vld [vmem:[#allocation3 + $0x18] sm:$0xff]  ;;  %v247_v7 = vld [vmem:[#allocation3 + $0x20] sm:$0xff] }
  0x14   :  { %v35_v5 = vmul.f32 %v237_v2, %v237_v2  ;;  %v249_v8 = vld [vmem:[#allocation3 + $0x28] sm:$0xff]  ;;  %v36_v9 = vmul.f32 %v245_v6, %v245_v6  ;;  %v37_v10 = vmul.f32 %v247_v7, %v247_v7  ;;  %v257_v12 = vld [vmem:[#allocation3 + $0x30] sm:$0xff]  ;;  %v259_v13 = vld [vmem:[#allocation3 + $0x38] sm:$0xff] }
  0x15   :  { %v38_v11 = vmul.f32 %v249_v8, %v249_v8  ;;  %v41_v14 = vrot.slane %v33_v3, 4  ;;  %v47_v15 = vrot.slane %v34_v4, 4  ;;  %v39_v17 = vmul.f32 %v257_v12, %v257_v12 }
  0x16   :  { %v53_v16 = vrot.slane %v35_v5, 4  ;;  %v59_v18 = vrot.slane %v36_v9, 4  ;;  %v65_v19 = vrot.slane %v37_v10, 4  ;;  %v40_v21 = vmul.f32 %v259_v13, %v259_v13 }
  0x17   :  { %v71_v20 = vrot.slane %v38_v11, 4  ;;  %v42_v22 = vadd.f32 %v41_v14, %v33_v3  ;;  %v48_v23 = vadd.f32 %v47_v15, %v34_v4  ;;  %v77_v25 = vrot.slane %v39_v17, 4 }
  0x18   :  { %v54_v24 = vadd.f32 %v53_v16, %v35_v5  ;;  %v60_v26 = vadd.f32 %v59_v18, %v36_v9  ;;  %v66_v27 = vadd.f32 %v65_v19, %v37_v10  ;;  %v83_v29 = vrot.slane %v40_v21, 4 }
  0x19   :  { %v72_v28 = vadd.f32 %v71_v20, %v38_v11  ;;  %v43_v30 = vrot.slane %v42_v22, 2  ;;  %v49_v31 = vrot.slane %v48_v23, 2  ;;  %v78_v33 = vadd.f32 %v77_v25, %v39_v17 }
  0x1a   :  { %v55_v32 = vrot.slane %v54_v24, 2  ;;  %v61_v34 = vrot.slane %v60_v26, 2  ;;  %v67_v35 = vrot.slane %v66_v27, 2  ;;  %v84_v37 = vadd.f32 %v83_v29, %v40_v21 }
  0x1b   :  { %v73_v36 = vrot.slane %v72_v28, 2  ;;  %v44_v38 = vadd.f32 %v43_v30, %v42_v22  ;;  %v50_v39 = vadd.f32 %v49_v31, %v48_v23  ;;  %v79_v41 = vrot.slane %v78_v33, 2 }
  0x1c   :  { %v56_v40 = vadd.f32 %v55_v32, %v54_v24  ;;  %v62_v42 = vadd.f32 %v61_v34, %v60_v26  ;;  %v68_v43 = vadd.f32 %v67_v35, %v66_v27  ;;  %v85_v45 = vrot.slane %v84_v37, 2 }
  0x1d   :  { %v74_v44 = vadd.f32 %v73_v36, %v72_v28  ;;  %v45_v46 = vrot.slane %v44_v38, 1  ;;  %v51_v47 = vrot.slane %v50_v39, 1  ;;  %v80_v49 = vadd.f32 %v79_v41, %v78_v33 }
  0x1e   :  { %v57_v48 = vrot.slane %v56_v40, 1  ;;  %v63_v50 = vrot.slane %v62_v42, 1  ;;  %v69_v51 = vrot.slane %v68_v43, 1  ;;  %v86_v53 = vadd.f32 %v85_v45, %v84_v37 }
  0x1f   :  { %v75_v52 = vrot.slane %v74_v44, 1  ;;  %v46_v54 = vadd.f32 %v45_v46, %v44_v38  ;;  %v52_v55 = vadd.f32 %v51_v47, %v50_v39  ;;  %v81_v57 = vrot.slane %v80_v49, 1 }
  0x20   :  { %v58_v56 = vadd.f32 %v57_v48, %v56_v40  ;;  %v64_v58 = vadd.f32 %v63_v50, %v62_v42  ;;  %v87_v59 = vrot.slane %v86_v53, 1  ;;  %v70_v60 = vadd.f32 %v69_v51, %v68_v43 }
  0x21   :  { %140 = vrsqrt.f32 %v46_v54  ;;  %v76_v61 = vadd.f32 %v75_v52, %v74_v44  ;;  %v82_v62 = vadd.f32 %v81_v57, %v80_v49  ;;  %v98_v3 = vstv %s288_s0  ;;  %s205_s0 = smov [#allocation6]  }
  0x22   :  { %142 = vrsqrt.f32 %v52_v55  ;;  %v88_v63 = vadd.f32 %v87_v59, %v86_v53  ;;  %s129_s22 = sshll.u32 %s205_s0, 4  ;;  %s130_s22 = int_to_ptr.vmem [resolvable:$true] %s129_s22 }
  0x23   :  { %144 = vrsqrt.f32 %v58_v56  ;;  %s178_s23 = scalar_lea.vmem %s130_s22, 1024  ;;  %p183_p9 = scmp.lt.s32.totalorder %s130_s22, %s130_s22 }
  0x24   :  { %146 = vrsqrt.f32 %v64_v58  ;;  %p179_p8 = scmp.ne.s32.totalorder %s130_s22, %s178_s23  ;;  %p184_p10 = scmp.lt.s32.totalorder %s178_s23, %s178_s23 }
  0x25   :  { %148 = vrsqrt.f32 %v70_v60 }
  0x26   :  { %150 = vrsqrt.f32 %v76_v61  ;;  %p185_p11 = por %p184_p10, %p183_p9 }
  0x27   :  { %152 = vrsqrt.f32 %v82_v62 }
  0x28   :  { %154 = vrsqrt.f32 %v88_v63  ;;  %p186_p12 = pnand %p185_p11, %p179_p8 }
  0x2b   :  { %v141_v4 = vpop.eup %140 }
  0x2c   :  { %v143_v5 = vpop.eup %142  ;;  %v99_v9 = vmul.f32 %v141_v4, %v98_v3 }
  0x2d   :  { %v145_v10 = vpop.eup %144  ;;  %v100_v11 = vmul.f32 %v143_v5, %v98_v3 }
  0x2e   :  { %v147_v14 = vpop.eup %146  ;;  %v107_v15 = vmul.f32 %v99_v9, %v233_v0  ;;  %v101_v16 = vmul.f32 %v145_v10, %v98_v3 }
  0x2f   :  { %v149_v17 = vpop.eup %148  ;;  %v108_v18 = vmul.f32 %v100_v11, %v235_v1  ;;  %v102_v19 = vmul.f32 %v147_v14, %v98_v3 }
  0x30   :  { %v151_v20 = vpop.eup %150  ;;  %115 = vst [vmem:[#allocation6] sm:$0xff] %v107_v15  ;;  %v109_v21 = vmul.f32 %v101_v16, %v237_v2  ;;  %v103_v22 = vmul.f32 %v149_v17, %v98_v3 }
  0x31   :  { %v153_v23 = vpop.eup %152  ;;  %116 = vst [vmem:[#allocation6 + $0x8] sm:$0xff] %v108_v18  ;;  %v110_v24 = vmul.f32 %v102_v19, %v245_v6  ;;  %v104_v25 = vmul.f32 %v151_v20, %v98_v3 }
  0x32   :  { %v155_v26 = vpop.eup %154  ;;  %117 = vst [vmem:[#allocation6 + $0x10] sm:$0xff] %v109_v21  ;;  %v111_v27 = vmul.f32 %v103_v22, %v247_v7  ;;  %v105_v0 = vmul.f32 %v153_v23, %v98_v3 }
  0x33   :  { %118 = vst [vmem:[#allocation6 + $0x18] sm:$0xff] %v110_v24  ;;  %v112_v1 = vmul.f32 %v104_v25, %v249_v8  ;;  %v106_v28 = vmul.f32 %v155_v26, %v98_v3 }
  0x34   :  { %119 = vst [vmem:[#allocation6 + $0x20] sm:$0xff] %v111_v27  ;;  %v113_v2 = vmul.f32 %v105_v0, %v257_v12 }
  0x35   :  { %120 = vst [vmem:[#allocation6 + $0x28] sm:$0xff] %v112_v1  ;;  %v114_v29 = vmul.f32 %v106_v28, %v259_v13 }
  0x36   :  { %121 = vst [vmem:[#allocation6 + $0x30] sm:$0xff] %v113_v2 }
  0x37   :  { %122 = vst [vmem:[#allocation6 + $0x38] sm:$0xff] %v114_v29 }
  0x38   :  { %189 = shalt.err (!%p186_p12)
}
  0x39   :  { %s190_s26 = scalar_lea.hbm %s290_s2, 1024 }
  0x3a   :  { %p191_p13 = scmp.ne.s32.totalorder %s290_s2, %s190_s26  ;;  %p194_p0 = scmp.lt.u32.totalorder %s190_s26, %s290_s2 }
  0x3c   :  { %p196_p1 = pnand %p194_p0, %p191_p13 }
  0x3e   :  { %199 = shalt.err (!%p196_p1)
}
  0x3f   :  { %132 = dma.vmem_to_hbm [thread:$0]  %s130_s22, 1024, %s290_s2, [#allocation5]  }
  0x40   :  { %202 = dma.done.wait [#allocation5], 1024  }
  0x41   :  { %203 = vsyncadd [#allocation5], 4294966272 }
  0x42   :  { %136 = vsyncpa [#allocation4], 1 }
  0x43   :  { %137 = vsyncpa [#allocation5], 1 }

</bundles_post_ra>
